<compile_context>
chip_gen: v7x
topology: tpu7x:2x2x1
jax: 0.10.0
libtpu: 0.0.40
codegen_flags: <defaults>
</compile_context>

<pallas_src>
import jax
import jax.numpy as jnp
from jax.experimental import pallas as pl
from jax.experimental.pallas import tpu as pltpu

INPUT_SIZE = 1
HIDDEN_SIZE1 = 10
NUM_CLASSES = 1

LANES = 128                     # vreg lane width (last dim)
SUBLANES = 8                    # f32 sublane count (second-to-last dim)
PAD_QUANTUM = SUBLANES * LANES  # 1024 elements: minimal pad quantum for (rows,128) f32


def _default_compute_dtype():
    """bf16 VALU/EUP exist on v6e/v7x (~2x elementwise+tanh throughput there);
    v5e and older chips lack them, so stay in f32."""
    try:
        kind = jax.devices()[0].device_kind.lower()
    except Exception:
        return jnp.float32
    if "v6" in kind or "v7" in kind or "7x" in kind:
        return jnp.bfloat16
    return jnp.float32


def _make_mlp_kernel(compute_dtype):
    def mlp_kernel(x_ref, w1_ref, b1_ref, w2_ref, b2_ref, o_ref):
        """Elementwise MLP over one lane-dense (TR, 128) batch tile.

        x_ref / o_ref : VMEM (TR, 128) f32 tiles of the flattened batch
        w1/b1/w2      : SMEM (HIDDEN_SIZE1,) f32  (fc1 weight, fc1 bias, fc2 weight)
        b2            : SMEM (1,) f32             (fc2 bias)
        """
        x = x_ref[...].astype(compute_dtype)

        def term(h):
            w1 = w1_ref[h].astype(compute_dtype)
            b1 = b1_ref[h].astype(compute_dtype)
            w2 = w2_ref[h].astype(compute_dtype)
            # tanh goes to the (otherwise idle) EUP slot; the rest is VPU work.
            return w2 * jnp.tanh(w1 * x + b1)

        # Two interleaved accumulators (shorter serial add chain -> more ILP),
        # initialized from the first two terms (no zeros init / add-to-zero).
        accs = [term(0), term(1)]
        for h in range(2, HIDDEN_SIZE1):
            accs[h % 2] = accs[h % 2] + term(h)

        # Final combine + fc2 bias in f32 (also the single cast point when
        # compute_dtype is bf16).
        o_ref[...] = accs[0].astype(jnp.float32) + accs[1].astype(jnp.float32) + b2_ref[0]

    return mlp_kernel


def net_forward(x, w1, b1, w2, b2, *, max_tile_rows=4096, compute_dtype=None):
    """x: [B, INPUT_SIZE] f32 -> [B, NUM_CLASSES] f32."""
    assert INPUT_SIZE == 1 and NUM_CLASSES == 1, "elementwise formulation needs 1->...->1"
    assert x.ndim == 2 and x.shape[1] == INPUT_SIZE
    B = x.shape[0]
    if compute_dtype is None:
        compute_dtype = _default_compute_dtype()

    # --- lane-dense batch layout: (B, 1) -> (R, 128), R a multiple of 8 ---
    xf = x.reshape(-1)                       # free, no data movement
    pad = (-B) % PAD_QUANTUM                 # pad quantum 8*128, not TR*128
    if pad:
        # TODO(synk): for huge ragged batches, pass a row-count scalar and mask the
        # tail inside the kernel instead of this one extra pass over the batch.
        xf = jnp.pad(xf, (0, pad))
    R = (B + pad) // LANES                   # rows, multiple of SUBLANES
    x2 = xf.reshape(R, LANES)

    # --- tile rows: multiple of 8; big enough to amortize the ~0.35us/step
    # pipeline overhead; 4096 rows -> 2 MiB/block (~8 MiB in+out double-buffered,
    # safe under v5e's 16 MiB scoped VMEM and v7x's 32 MiB); when the batch is
    # big enough keep >= 2 grid steps so "parallel" can shard across v7x's 2 TCs.
    TR = max(SUBLANES, (min(max_tile_rows, R) // SUBLANES) * SUBLANES)
    if R >= 2 * SUBLANES:
        half = max(SUBLANES, ((-(-R // 2)) // SUBLANES) * SUBLANES)
        TR = min(TR, half)
    grid = (pl.cdiv(R, TR),)                 # last block may be partial (masked by Pallas)

    smem = pl.BlockSpec(memory_space=pltpu.MemorySpace.SMEM)
    out2 = pl.pallas_call(
        _make_mlp_kernel(compute_dtype),
        out_shape=jax.ShapeDtypeStruct((R, LANES), jnp.float32),
        grid=grid,
        in_specs=[
            pl.BlockSpec((TR, LANES), lambda i: (i, 0)),   # batch tile, auto double-buffered
            smem,                                          # w1 (10,)  SMEM-resident
            smem,                                          # b1 (10,)
            smem,                                          # w2 (10,)
            smem,                                          # b2 (1,)
        ],
        out_specs=pl.BlockSpec((TR, LANES), lambda i: (i, 0)),  # lane-dense -> unmasked vst
        compiler_params=pltpu.CompilerParams(
            # batch tiles are independent -> shard across both TensorCores on v7x
            dimension_semantics=("parallel",),
        ),
    )(x2, w1, b1, w2, b2)

    out_flat = out2.reshape(-1)              # free
    if pad:
        out_flat = out_flat[:B]              # only copies when a ragged tail exists
    return out_flat.reshape(B, NUM_CLASSES)


def init_params(key):
    """Deterministic init mimicking torch.nn.Linear default U(-1/sqrt(fan_in), 1/sqrt(fan_in))."""
    k1, k2, k3, k4 = jax.random.split(key, 4)
    bound1 = 1.0 / jnp.sqrt(jnp.float32(INPUT_SIZE))
    bound2 = 1.0 / jnp.sqrt(jnp.float32(HIDDEN_SIZE1))
    w1 = jax.random.uniform(k1, (HIDDEN_SIZE1,), jnp.float32, minval=-bound1, maxval=bound1)
    b1 = jax.random.uniform(k2, (HIDDEN_SIZE1,), jnp.float32, minval=-bound1, maxval=bound1)
    w2 = jax.random.uniform(k3, (HIDDEN_SIZE1,), jnp.float32, minval=-bound2, maxval=bound2)
    b2 = jax.random.uniform(k4, (NUM_CLASSES,), jnp.float32, minval=-bound2, maxval=bound2)
    return w1, b1, w2, b2


def reference(x, w1, b1, w2, b2):
    h = jnp.tanh(x * w1[None, :] + b1[None, :])          # (B, 10)
    return h @ w2[:, None] + b2[None, :]                 # (B, 1)


if __name__ == "__main__":
    key = jax.random.PRNGKey(0)
    kp, kx = jax.random.split(key)
    w1, b1, w2, b2 = init_params(kp)

    cd = _default_compute_dtype()
    # bf16 tanh + bf16 accumulation carries ~1e-2 absolute error; relax tolerance there.
    tol = dict(atol=1e-5, rtol=1e-5) if cd == jnp.float32 else dict(atol=1.5e-1, rtol=5e-2)

    cases = [
        (8, 4096),     # tiny batch: single tile, padded tail
        (2048, 4096),  # pad == 0 fast path, grid split in two (megacore)
        (2000, 8),     # ragged batch, multi-step grid with tiny tiles
        (5000, 16),    # R=40, TR=16 -> grid=3 with a partial (masked) last block
    ]
    for B, mtr in cases:
        kx, sub = jax.random.split(kx)
        x = jax.random.normal(sub, (B, INPUT_SIZE), jnp.float32)
        out = jax.block_until_ready(net_forward(x, w1, b1, w2, b2, max_tile_rows=mtr))
        assert out.shape == (B, NUM_CLASSES)
        ref = reference(x, w1, b1, w2, b2)
        assert jnp.allclose(out, ref, **tol), f"mismatch at B={B}, max_tile_rows={mtr}"

    print("KERNEL_OK")
</pallas_src>

<mosaic_0001>
module attributes {stable_mosaic.version = 11 : i64} {
  func.func @mlp_kernel(%arg0: i32, %arg1: memref<8x128xf32, #tpu.memory_space<vmem>>, %arg2: memref<10xf32, #tpu.memory_space<smem>>, %arg3: memref<10xf32, #tpu.memory_space<smem>>, %arg4: memref<10xf32, #tpu.memory_space<smem>>, %arg5: memref<1xf32, #tpu.memory_space<smem>>, %arg6: memref<8x128xf32, #tpu.memory_space<vmem>>) attributes {dimension_semantics = [#tpu.dimension_semantics<parallel>], iteration_bounds = array<i64: 1>, scalar_prefetch = 0 : i64, scratch_operands = 0 : i64, tpu.core_type = #tpu.core_type<tc>, window_params = [{transform_indices = @transform_0, window_bounds = array<i64: 8, 128>}, {transform_indices = @transform_1, window_bounds = array<i64: 10>}, {transform_indices = @transform_2, window_bounds = array<i64: 10>}, {transform_indices = @transform_3, window_bounds = array<i64: 10>}, {transform_indices = @transform_4, window_bounds = array<i64: 1>}, {transform_indices = @transform_5, window_bounds = array<i64: 8, 128>}]} {
    %c0 = arith.constant 0 : index
    %c0_0 = arith.constant 0 : index
    %0 = vector.load %arg1[%c0, %c0_0] : memref<8x128xf32, #tpu.memory_space<vmem>>, vector<8x128xf32>
    %c0_1 = arith.constant 0 : index
    %1 = memref.load %arg2[%c0_1] : memref<10xf32, #tpu.memory_space<smem>>
    %c0_2 = arith.constant 0 : index
    %2 = memref.load %arg3[%c0_2] : memref<10xf32, #tpu.memory_space<smem>>
    %c0_3 = arith.constant 0 : index
    %3 = memref.load %arg4[%c0_3] : memref<10xf32, #tpu.memory_space<smem>>
    %4 = vector.broadcast %1 : f32 to vector<8x128xf32>
    %5 = arith.mulf %4, %0 : vector<8x128xf32>
    %6 = vector.broadcast %2 : f32 to vector<8x128xf32>
    %7 = arith.addf %5, %6 : vector<8x128xf32>
    %8 = math.tanh %7 : vector<8x128xf32>
    %9 = vector.broadcast %3 : f32 to vector<8x128xf32>
    %10 = arith.mulf %9, %8 : vector<8x128xf32>
    %c1 = arith.constant 1 : index
    %11 = memref.load %arg2[%c1] : memref<10xf32, #tpu.memory_space<smem>>
    %c1_4 = arith.constant 1 : index
    %12 = memref.load %arg3[%c1_4] : memref<10xf32, #tpu.memory_space<smem>>
    %c1_5 = arith.constant 1 : index
    %13 = memref.load %arg4[%c1_5] : memref<10xf32, #tpu.memory_space<smem>>
    %14 = vector.broadcast %11 : f32 to vector<8x128xf32>
    %15 = arith.mulf %14, %0 : vector<8x128xf32>
    %16 = vector.broadcast %12 : f32 to vector<8x128xf32>
    %17 = arith.addf %15, %16 : vector<8x128xf32>
    %18 = math.tanh %17 : vector<8x128xf32>
    %19 = vector.broadcast %13 : f32 to vector<8x128xf32>
    %20 = arith.mulf %19, %18 : vector<8x128xf32>
    %c2 = arith.constant 2 : index
    %21 = memref.load %arg2[%c2] : memref<10xf32, #tpu.memory_space<smem>>
    %c2_6 = arith.constant 2 : index
    %22 = memref.load %arg3[%c2_6] : memref<10xf32, #tpu.memory_space<smem>>
    %c2_7 = arith.constant 2 : index
    %23 = memref.load %arg4[%c2_7] : memref<10xf32, #tpu.memory_space<smem>>
    %24 = vector.broadcast %21 : f32 to vector<8x128xf32>
    %25 = arith.mulf %24, %0 : vector<8x128xf32>
    %26 = vector.broadcast %22 : f32 to vector<8x128xf32>
    %27 = arith.addf %25, %26 : vector<8x128xf32>
    %28 = math.tanh %27 : vector<8x128xf32>
    %29 = vector.broadcast %23 : f32 to vector<8x128xf32>
    %30 = arith.mulf %29, %28 : vector<8x128xf32>
    %31 = arith.addf %10, %30 : vector<8x128xf32>
    %c3 = arith.constant 3 : index
    %32 = memref.load %arg2[%c3] : memref<10xf32, #tpu.memory_space<smem>>
    %c3_8 = arith.constant 3 : index
    %33 = memref.load %arg3[%c3_8] : memref<10xf32, #tpu.memory_space<smem>>
    %c3_9 = arith.constant 3 : index
    %34 = memref.load %arg4[%c3_9] : memref<10xf32, #tpu.memory_space<smem>>
    %35 = vector.broadcast %32 : f32 to vector<8x128xf32>
    %36 = arith.mulf %35, %0 : vector<8x128xf32>
    %37 = vector.broadcast %33 : f32 to vector<8x128xf32>
    %38 = arith.addf %36, %37 : vector<8x128xf32>
    %39 = math.tanh %38 : vector<8x128xf32>
    %40 = vector.broadcast %34 : f32 to vector<8x128xf32>
    %41 = arith.mulf %40, %39 : vector<8x128xf32>
    %42 = arith.addf %20, %41 : vector<8x128xf32>
    %c4 = arith.constant 4 : index
    %43 = memref.load %arg2[%c4] : memref<10xf32, #tpu.memory_space<smem>>
    %c4_10 = arith.constant 4 : index
    %44 = memref.load %arg3[%c4_10] : memref<10xf32, #tpu.memory_space<smem>>
    %c4_11 = arith.constant 4 : index
    %45 = memref.load %arg4[%c4_11] : memref<10xf32, #tpu.memory_space<smem>>
    %46 = vector.broadcast %43 : f32 to vector<8x128xf32>
    %47 = arith.mulf %46, %0 : vector<8x128xf32>
    %48 = vector.broadcast %44 : f32 to vector<8x128xf32>
    %49 = arith.addf %47, %48 : vector<8x128xf32>
    %50 = math.tanh %49 : vector<8x128xf32>
    %51 = vector.broadcast %45 : f32 to vector<8x128xf32>
    %52 = arith.mulf %51, %50 : vector<8x128xf32>
    %53 = arith.addf %31, %52 : vector<8x128xf32>
    %c5 = arith.constant 5 : index
    %54 = memref.load %arg2[%c5] : memref<10xf32, #tpu.memory_space<smem>>
    %c5_12 = arith.constant 5 : index
    %55 = memref.load %arg3[%c5_12] : memref<10xf32, #tpu.memory_space<smem>>
    %c5_13 = arith.constant 5 : index
    %56 = memref.load %arg4[%c5_13] : memref<10xf32, #tpu.memory_space<smem>>
    %57 = vector.broadcast %54 : f32 to vector<8x128xf32>
    %58 = arith.mulf %57, %0 : vector<8x128xf32>
    %59 = vector.broadcast %55 : f32 to vector<8x128xf32>
    %60 = arith.addf %58, %59 : vector<8x128xf32>
    %61 = math.tanh %60 : vector<8x128xf32>
    %62 = vector.broadcast %56 : f32 to vector<8x128xf32>
    %63 = arith.mulf %62, %61 : vector<8x128xf32>
    %64 = arith.addf %42, %63 : vector<8x128xf32>
    %c6 = arith.constant 6 : index
    %65 = memref.load %arg2[%c6] : memref<10xf32, #tpu.memory_space<smem>>
    %c6_14 = arith.constant 6 : index
    %66 = memref.load %arg3[%c6_14] : memref<10xf32, #tpu.memory_space<smem>>
    %c6_15 = arith.constant 6 : index
    %67 = memref.load %arg4[%c6_15] : memref<10xf32, #tpu.memory_space<smem>>
    %68 = vector.broadcast %65 : f32 to vector<8x128xf32>
    %69 = arith.mulf %68, %0 : vector<8x128xf32>
    %70 = vector.broadcast %66 : f32 to vector<8x128xf32>
    %71 = arith.addf %69, %70 : vector<8x128xf32>
    %72 = math.tanh %71 : vector<8x128xf32>
    %73 = vector.broadcast %67 : f32 to vector<8x128xf32>
    %74 = arith.mulf %73, %72 : vector<8x128xf32>
    %75 = arith.addf %53, %74 : vector<8x128xf32>
    %c7 = arith.constant 7 : index
    %76 = memref.load %arg2[%c7] : memref<10xf32, #tpu.memory_space<smem>>
    %c7_16 = arith.constant 7 : index
    %77 = memref.load %arg3[%c7_16] : memref<10xf32, #tpu.memory_space<smem>>
    %c7_17 = arith.constant 7 : index
    %78 = memref.load %arg4[%c7_17] : memref<10xf32, #tpu.memory_space<smem>>
    %79 = vector.broadcast %76 : f32 to vector<8x128xf32>
    %80 = arith.mulf %79, %0 : vector<8x128xf32>
    %81 = vector.broadcast %77 : f32 to vector<8x128xf32>
    %82 = arith.addf %80, %81 : vector<8x128xf32>
    %83 = math.tanh %82 : vector<8x128xf32>
    %84 = vector.broadcast %78 : f32 to vector<8x128xf32>
    %85 = arith.mulf %84, %83 : vector<8x128xf32>
    %86 = arith.addf %64, %85 : vector<8x128xf32>
    %c8 = arith.constant 8 : index
    %87 = memref.load %arg2[%c8] : memref<10xf32, #tpu.memory_space<smem>>
    %c8_18 = arith.constant 8 : index
    %88 = memref.load %arg3[%c8_18] : memref<10xf32, #tpu.memory_space<smem>>
    %c8_19 = arith.constant 8 : index
    %89 = memref.load %arg4[%c8_19] : memref<10xf32, #tpu.memory_space<smem>>
    %90 = vector.broadcast %87 : f32 to vector<8x128xf32>
    %91 = arith.mulf %90, %0 : vector<8x128xf32>
    %92 = vector.broadcast %88 : f32 to vector<8x128xf32>
    %93 = arith.addf %91, %92 : vector<8x128xf32>
    %94 = math.tanh %93 : vector<8x128xf32>
    %95 = vector.broadcast %89 : f32 to vector<8x128xf32>
    %96 = arith.mulf %95, %94 : vector<8x128xf32>
    %97 = arith.addf %75, %96 : vector<8x128xf32>
    %c9 = arith.constant 9 : index
    %98 = memref.load %arg2[%c9] : memref<10xf32, #tpu.memory_space<smem>>
    %c9_20 = arith.constant 9 : index
    %99 = memref.load %arg3[%c9_20] : memref<10xf32, #tpu.memory_space<smem>>
    %c9_21 = arith.constant 9 : index
    %100 = memref.load %arg4[%c9_21] : memref<10xf32, #tpu.memory_space<smem>>
    %101 = vector.broadcast %98 : f32 to vector<8x128xf32>
    %102 = arith.mulf %101, %0 : vector<8x128xf32>
    %103 = vector.broadcast %99 : f32 to vector<8x128xf32>
    %104 = arith.addf %102, %103 : vector<8x128xf32>
    %105 = math.tanh %104 : vector<8x128xf32>
    %106 = vector.broadcast %100 : f32 to vector<8x128xf32>
    %107 = arith.mulf %106, %105 : vector<8x128xf32>
    %108 = arith.addf %86, %107 : vector<8x128xf32>
    %109 = arith.addf %97, %108 : vector<8x128xf32>
    %c0_22 = arith.constant 0 : index
    %110 = memref.load %arg5[%c0_22] : memref<1xf32, #tpu.memory_space<smem>>
    %111 = vector.broadcast %110 : f32 to vector<8x128xf32>
    %112 = arith.addf %109, %111 : vector<8x128xf32>
    %c0_23 = arith.constant 0 : index
    %c0_24 = arith.constant 0 : index
    %113 = vector.load %arg6[%c0_23, %c0_24] : memref<8x128xf32, #tpu.memory_space<vmem>>, vector<8x128xf32>
    tpu.vector_store %arg6[%c0_23, %c0_24], %112 {strides = array<i32>} : memref<8x128xf32, #tpu.memory_space<vmem>>, vector<8x128xf32>,
    return
  }
  func.func @transform_0(%arg0: i32) -> (i32, i32) {
    %c0_i32 = arith.constant 0 : i32
    %c0_i32_0 = arith.constant 0 : i32
    return %arg0, %c0_i32 : i32, i32
  }
  func.func @transform_1(%arg0: i32) -> i32 {
    %c0_i32 = arith.constant 0 : i32
    %c0_i32_0 = arith.constant 0 : i32
    return %c0_i32 : i32
  }
  func.func @transform_2(%arg0: i32) -> i32 {
    %c0_i32 = arith.constant 0 : i32
    %c0_i32_0 = arith.constant 0 : i32
    return %c0_i32 : i32
  }
  func.func @transform_3(%arg0: i32) -> i32 {
    %c0_i32 = arith.constant 0 : i32
    %c0_i32_0 = arith.constant 0 : i32
    return %c0_i32 : i32
  }
  func.func @transform_4(%arg0: i32) -> i32 {
    %c0_i32 = arith.constant 0 : i32
    %c0_i32_0 = arith.constant 0 : i32
    return %c0_i32 : i32
  }
  func.func @transform_5(%arg0: i32) -> (i32, i32) {
    %c0_i32 = arith.constant 0 : i32
    %c0_i32_0 = arith.constant 0 : i32
    return %arg0, %c0_i32 : i32, i32
  }
}

</mosaic_0001>

<bundles_post_ra>
// kernel: tpu_custom_call.1
= control target key start
LH: loop header
LB: loop body
LE: loop exit
PB: predicated region body
PF: predicated region fallthrough
CT: control target
= control target key end

     0   :  { %11 = vsyncpa [#allocation4], 0  ;;  %s481_s0 = inlined_call_operand.hbm [shape: f32[8,128], index: 0, kind: input, shape index: {}]   ;;  %s482_s1 = inlined_call_operand.vmem [shape: f32[10], index: 1, kind: input, shape index: {}]   ;;  %s483_s2 = inlined_call_operand.vmem [shape: f32[10], index: 2, kind: input, shape index: {}]   ;;  %s484_s3 = inlined_call_operand.vmem [shape: f32[10], index: 3, kind: input, shape index: {}]   ;;  %s485_s4 = inlined_call_operand.<no memory space> [shape: f32[1], index: 4, kind: input, shape index: {}]   ;;  %s486_s5 = inlined_call_operand.hbm [shape: f32[8,128], index: 5, kind: output, shape index: {}]  }
   0x1   :  { %12 = vsyncpa [#allocation6], 0 }
   0x2   :  { %13 = vsyncpa [#allocation9], 0  ;;  %s41_s20 = sshll.u32 %s483_s2, 4  ;;  %s42_s20 = int_to_ptr.vmem [resolvable:$true] %s41_s20 }
   0x3   :  { %14 = vsyncpa [#allocation5], 0  ;;  %s253_s21 = scalar_lea.vmem %s42_s20, 16  ;;  %p258_p1 = scmp.lt.s32.totalorder %s42_s20, %s42_s20 }
   0x4   :  { %p254_p0 = scmp.ne.s32.totalorder %s42_s20, %s253_s21  ;;  %p259_p2 = scmp.lt.s32.totalorder %s253_s21, %s253_s21 }
   0x6   :  { %p260_p3 = por %p259_p2, %p258_p1 }
   0x8   :  { %p261_p4 = pnand %p260_p3, %p254_p0 }
   0xa   :  { %264 = shalt.err (!%p261_p4)
}
   0xb   :  { %s341_s22 = smov [#allocation8]   ;;  %s342_s23 = smov [#allocation3]  }
   0xc   :  { %44 = dma.vmem_to_smem %s42_s20, 16, %s341_s22, [#allocation9]  }
   0xd   :  { %s21_s24 = sshll.u32 %s342_s23, 4  ;;  %s31_s27 = sshll.u32 %s482_s1, 4  ;;  %s22_s24 = int_to_ptr.vmem [resolvable:$true] %s21_s24  ;;  %s32_s27 = int_to_ptr.vmem [resolvable:$true] %s31_s27 }
   0xe   :  { %s265_s29 = scalar_lea.hbm %s481_s0, 128 }
   0xf   :  { %p266_p5 = scmp.ne.s32.totalorder %s481_s0, %s265_s29  ;;  %p269_p6 = scmp.lt.u32.totalorder %s265_s29, %s481_s0 }
  0x11   :  { %p271_p7 = pnand %p269_p6, %p266_p5 }
  0x13   :  { %274 = shalt.err (!%p271_p7)
}
  0x14   :  { %s275_s9 = scalar_lea.vmem %s22_s24, 128  ;;  %p280_p9 = scmp.lt.s32.totalorder %s22_s24, %s22_s24 }
  0x15   :  { %p276_p8 = scmp.ne.s32.totalorder %s22_s24, %s275_s9  ;;  %p281_p10 = scmp.lt.s32.totalorder %s275_s9, %s275_s9 }
  0x17   :  { %p282_p11 = por %p281_p10, %p280_p9 }
  0x19   :  { %p283_p12 = pnand %p282_p11, %p276_p8 }
  0x1b   :  { %286 = shalt.err (!%p283_p12)
}
  0x1c   :  { %24 = dma.hbm_to_vmem [thread:$0]  %s481_s0, 128, %s22_s24, [#allocation4]  }
  0x1d   :  { %s51_s13 = sshll.u32 %s484_s3, 4  ;;  %s287_s14 = scalar_lea.vmem %s32_s27, 16  ;;  %s52_s13 = int_to_ptr.vmem [resolvable:$true] %s51_s13 }
  0x1e   :  { %p288_p13 = scmp.ne.s32.totalorder %s32_s27, %s287_s14  ;;  %p292_p0 = scmp.lt.s32.totalorder %s32_s27, %s32_s27 }
  0x1f   :  { %p293_p1 = scmp.lt.s32.totalorder %s287_s14, %s287_s14 }
  0x21   :  { %p294_p2 = por %p293_p1, %p292_p0 }
  0x23   :  { %p295_p3 = pnand %p294_p2, %p288_p13 }
  0x25   :  { %298 = shalt.err (!%p295_p3)
}
  0x26   :  { %s343_s15 = smov [#allocation7]   ;;  %s299_s16 = scalar_lea.vmem %s52_s13, 16 }
  0x27   :  { %34 = dma.vmem_to_smem %s32_s27, 16, %s343_s15, [#allocation6]  }
  0x28   :  { %p300_p4 = scmp.ne.s32.totalorder %s52_s13, %s299_s16  ;;  %p304_p5 = scmp.lt.s32.totalorder %s52_s13, %s52_s13 }
  0x29   :  { %p305_p6 = scmp.lt.s32.totalorder %s299_s16, %s299_s16 }
  0x2b   :  { %p306_p7 = por %p305_p6, %p304_p5 }
  0x2d   :  { %p307_p8 = pnand %p306_p7, %p300_p4 }
  0x2f   :  { %310 = shalt.err (!%p307_p8)
}
  0x30   :  { %s344_s0 = smov [#allocation10]  }
  0x31   :  { %54 = dma.vmem_to_smem %s52_s13, 16, %s344_s0, [#allocation9]  }
  0x32   :  { %333 = dma.done.wait [#allocation4], 128  }
  0x33   :  { %334 = vsyncadd [#allocation4], 4294967168 }
  0x34   :  { %335 = dma.done.wait [#allocation6], 16  }
  0x35   :  { %336 = vsyncadd [#allocation6], 4294967280 }
  0x36   :  { %337 = dma.done.wait [#allocation9], 32  }
  0x37   :  { %338 = vsyncadd [#allocation9], 4294967264 }
  0x38   :  { %69 = sfence }
  0x39   :  { %s71_s3 = sld [smem:[#allocation7]]  ;;  %s201_s18 = sld [smem:[#allocation7 + $0x1]]  ;;  %v397_v0 = vld [vmem:[#allocation3] sm:$0xff] }
  0x3a   :  { %s72_s17 = sld [smem:[#allocation8]]  ;;  %s202_s19 = sld [smem:[#allocation8 + $0x1]] }
  0x3b   :  { %s204_s20 = sld [smem:[#allocation7 + $0x2]]  ;;  %s207_s22 = sld [smem:[#allocation7 + $0x3]] }
  0x3c   :  { %s205_s21 = sld [smem:[#allocation8 + $0x2]]  ;;  %s399_s23 = sld [smem:[#allocation8 + $0x3]] }
  0x3d   :  { %s210_s24 = sld [smem:[#allocation7 + $0x4]]  ;;  %s404_s26 = sld [smem:[#allocation7 + $0x5]] }
  0x3e   :  { %s401_s25 = sld [smem:[#allocation8 + $0x4]]  ;;  %s407_s27 = sld [smem:[#allocation8 + $0x5]] }
  0x3f   :  { %v74_v1 = vstv %s71_s3  ;;  %v84_v4 = vstv %s201_s18  ;;  %s409_s2 = sld [smem:[#allocation7 + $0x6]]  ;;  %s414_s29 = sld [smem:[#allocation7 + $0x7]] }
  0x40   :  { %v76_v2 = vstv %s72_s17  ;;  %v75_v3 = vmul.f32 %v74_v1, %v397_v0  ;;  %v85_v5 = vmul.f32 %v84_v4, %v397_v0  ;;  %v86_v6 = vstv %s202_s19  ;;  %s411_s28 = sld [smem:[#allocation8 + $0x6]]  ;;  %s416_s30 = sld [smem:[#allocation10]] }
  0x41   :  { %v94_v8 = vstv %s204_s20  ;;  %v105_v12 = vstv %s207_s22  ;;  %s420_s6 = sld [smem:[#allocation8 + $0x7]]  ;;  %s222_s7 = sld [smem:[#allocation7 + $0x8]] }
  0x42   :  { %v77_v7 = vadd.f32 %v76_v2, %v75_v3  ;;  %v96_v9 = vstv %s205_s21  ;;  %v87_v10 = vadd.f32 %v86_v6, %v85_v5  ;;  %v95_v11 = vmul.f32 %v94_v8, %v397_v0  ;;  %s423_s8 = sld [smem:[#allocation8 + $0x8]]  ;;  %s425_s9 = sld [smem:[#allocation10 + $0x1]] }
  0x43   :  { %v106_v13 = vmul.f32 %v105_v12, %v397_v0  ;;  %v107_v14 = vstv %s399_s23  ;;  %v116_v16 = vstv %s210_s24  ;;  %v127_v20 = vstv %s404_s26  ;;  %s225_s1 = sld [smem:[#allocation7 + $0x9]]  ;;  %s429_s10 = sld [smem:[#allocation10 + $0x2]] }
  0x44   :  { %233 = vtanh.f32 %v77_v7  ;;  %v97_v15 = vadd.f32 %v96_v9, %v95_v11  ;;  %v118_v17 = vstv %s401_s25  ;;  %v117_v19 = vmul.f32 %v116_v16, %v397_v0  ;;  %s433_s11 = sld [smem:[#allocation8 + $0x9]]  ;;  %s435_s12 = sld [smem:[#allocation10 + $0x3]] }
  0x45   :  { %235 = vtanh.f32 %v87_v10  ;;  %v108_v18 = vadd.f32 %v107_v14, %v106_v13  ;;  %v128_v21 = vmul.f32 %v127_v20, %v397_v0  ;;  %v129_v22 = vstv %s407_s27  ;;  %s441_s13 = sld [smem:[#allocation10 + $0x4]]  ;;  %s445_s14 = sld [smem:[#allocation10 + $0x5]] }
  0x46   :  { %237 = vtanh.f32 %v97_v15  ;;  %v119_v23 = vadd.f32 %v118_v17, %v117_v19  ;;  %v138_v24 = vstv %s409_s2  ;;  %v140_v25 = vstv %s411_s28  ;;  %s450_s15 = sld [smem:[#allocation10 + $0x6]]  ;;  %s455_s16 = sld [smem:[#allocation10 + $0x7]] }
  0x47   :  { %239 = vtanh.f32 %v108_v18  ;;  %v130_v26 = vadd.f32 %v129_v22, %v128_v21  ;;  %v139_v27 = vmul.f32 %v138_v24, %v397_v0  ;;  %v149_v28 = vstv %s414_s29  ;;  %s459_s0 = sld [smem:[#allocation10 + $0x8]]  ;;  %s227_s3 = sld [smem:[#allocation10 + $0x9]] }
  0x48   :  { %241 = vtanh.f32 %v119_v23  ;;  %v150_v29 = vmul.f32 %v149_v28, %v397_v0  ;;  %v151_v30 = vstv %s420_s6  ;;  %v160_v32 = vstv %s222_s7  ;;  %s345_s19 = smov [#allocation11]  }
  0x49   :  { %243 = vtanh.f32 %v130_v26  ;;  %v141_v31 = vadd.f32 %v140_v25, %v139_v27  ;;  %v162_v33 = vstv %s423_s8  ;;  %v161_v35 = vmul.f32 %v160_v32, %v397_v0  ;;  %s190_s20 = sshll.u32 %s345_s19, 4  ;;  %s191_s20 = int_to_ptr.vmem [resolvable:$true] %s190_s20 }
  0x4a   :  { %v152_v34 = vadd.f32 %v151_v30, %v150_v29  ;;  %v171_v36 = vstv %s225_s1  ;;  %v79_v37 = vstv %s416_s30  ;;  %v173_v39 = vstv %s433_s11  ;;  %s311_s21 = scalar_lea.vmem %s191_s20, 128  ;;  %p316_p10 = scmp.lt.s32.totalorder %s191_s20, %s191_s20 }
  0x4b   :  { %245 = vtanh.f32 %v141_v31  ;;  %v172_v38 = vmul.f32 %v171_v36, %v397_v0  ;;  %v89_v41 = vstv %s425_s9  ;;  %v163_v42 = vadd.f32 %v162_v33, %v161_v35  ;;  %p312_p9 = scmp.ne.s32.totalorder %s191_s20, %s311_s21  ;;  %p317_p11 = scmp.lt.s32.totalorder %s311_s21, %s311_s21 }
  0x4c   :  { %247 = vtanh.f32 %v152_v34  ;;  %v99_v44 = vstv %s429_s10  ;;  %v110_v47 = vstv %s435_s12  ;;  %v121_v52 = vstv %s441_s13 }
  0x4d   :  { %v174_v45 = vadd.f32 %v173_v39, %v172_v38  ;;  %249 = vtanh.f32 %v163_v42  ;;  %v132_v54 = vstv %s445_s14  ;;  %v143_v60 = vstv %s450_s15  ;;  %p318_p12 = por %p317_p11, %p316_p10 }
  0x4e   :  { %v234_v40 = vpop.eup %233  ;;  %v154_v62 = vstv %s455_s16  ;;  %v165_v4 = vstv %s459_s0  ;;  %v176_v6 = vstv %s227_s3  ;;  %v181_v15 = vstv %s485_s4 }
  0x4f   :  { %v236_v43 = vpop.eup %235  ;;  %v80_v46 = vmul.f32 %v234_v40, %v79_v37  ;;  %251 = vtanh.f32 %v174_v45  ;;  %p319_p13 = pnand %p318_p12, %p312_p9 }
  0x50   :  { %v238_v48 = vpop.eup %237  ;;  %v90_v49 = vmul.f32 %v236_v43, %v89_v41 }
  0x51   :  { %v240_v50 = vpop.eup %239  ;;  %v100_v51 = vmul.f32 %v238_v48, %v99_v44 }
  0x52   :  { %v111_v53 = vmul.f32 %v240_v50, %v110_v47  ;;  %v242_v55 = vpop.eup %241 }
  0x53   :  { %v101_v56 = vadd.f32 %v100_v51, %v80_v46  ;;  %v244_v57 = vpop.eup %243  ;;  %v122_v59 = vmul.f32 %v242_v55, %v121_v52 }
  0x54   :  { %v112_v58 = vadd.f32 %v111_v53, %v90_v49  ;;  %v133_v61 = vmul.f32 %v244_v57, %v132_v54 }
  0x55   :  { %v246_v63 = vpop.eup %245  ;;  %v123_v0 = vadd.f32 %v122_v59, %v101_v56 }
  0x56   :  { %v248_v1 = vpop.eup %247  ;;  %v134_v2 = vadd.f32 %v133_v61, %v112_v58  ;;  %v144_v3 = vmul.f32 %v246_v63, %v143_v60 }
  0x57   :  { %v155_v5 = vmul.f32 %v248_v1, %v154_v62  ;;  %v250_v7 = vpop.eup %249 }
  0x58   :  { %v145_v8 = vadd.f32 %v144_v3, %v123_v0  ;;  %v166_v11 = vmul.f32 %v250_v7, %v165_v4 }
  0x59   :  { %v252_v9 = vpop.eup %251  ;;  %v156_v10 = vadd.f32 %v155_v5, %v134_v2 }
  0x5a   :  { %v177_v12 = vmul.f32 %v252_v9, %v176_v6  ;;  %v167_v13 = vadd.f32 %v166_v11, %v145_v8 }
  0x5c   :  { %v178_v14 = vadd.f32 %v177_v12, %v156_v10 }
  0x5e   :  { %v179_v16 = vadd.f32 %v178_v14, %v167_v13 }
  0x60   :  { %v182_v17 = vadd.f32 %v181_v15, %v179_v16 }
  0x62   :  { %183 = vst [vmem:[#allocation11] sm:$0xff] %v182_v17 }
  0x63   :  { %322 = shalt.err (!%p319_p13)
}
  0x64   :  { %s323_s24 = scalar_lea.hbm %s486_s5, 128 }
  0x65   :  { %p324_p0 = scmp.ne.s32.totalorder %s486_s5, %s323_s24  ;;  %p327_p1 = scmp.lt.u32.totalorder %s323_s24, %s486_s5 }
  0x67   :  { %p329_p2 = pnand %p327_p1, %p324_p0 }
  0x69   :  { %332 = shalt.err (!%p329_p2)
}
  0x6a   :  { %193 = dma.vmem_to_hbm [thread:$0]  %s191_s20, 128, %s486_s5, [#allocation5]  }
  0x6b   :  { %339 = dma.done.wait [#allocation5], 128  }
  0x6c   :  { %340 = vsyncadd [#allocation5], 4294967168 }
  0x6d   :  { %197 = vsyncpa [#allocation4], 1 }
  0x6e   :  { %198 = vsyncpa [#allocation5], 1 }
  0x6f   :  { %199 = vsyncpa [#allocation6], 1 }
  0x70   :  { %200 = vsyncpa [#allocation9], 1 }

</bundles_post_ra>
